<compile_context>
chip_gen: v5e
topology: v5e:2x2
jax: 0.10.0
libtpu: 0.0.40
codegen_flags: <defaults>
</compile_context>

<pallas_src>
import jax
import jax.numpy as jnp
import numpy as np
from jax.experimental import pallas as pl
from jax.experimental.pallas import tpu as pltpu


# Taps where the anti-diagonal mask is 1: mask[:, :, 2 - c, c] = 1, c = 0, 1, 2.
# (kh, kw) -> input offset (kh - 1, kw - 1):
#   (2, 0) -> x[i+1, j-1],  (1, 1) -> x[i, j],  (0, 2) -> x[i-1, j+1]
TAPS = ((2, 0), (1, 1), (0, 2))


def get_mask_37(in_channels, out_channels, kernel_size=3):
    mask = np.zeros((out_channels, in_channels, 3, 3), dtype=np.float32)
    for c in range(kernel_size):
        mask[:, :, 2 - c, c] = 1.0
    return mask


def _pick_images_per_step(n, rows_per_image, target_rows=256):
    """Images per grid step: aim for >= 256 matmul rows per step (v6e/v7x MXU
    M-dim), keep >= 2 grid steps when the batch allows (v7x megacore), and
    divide the batch evenly."""
    nb = max(1, min(n, -(-target_rows // rows_per_image)))   # ceil-div target
    while n % nb:
        nb -= 1
    if n // nb < 2 and n >= 2:     # leave work for the second v7x TensorCore
        nb = max(1, n // 2)
        while n % nb:
            nb -= 1
    return nb


def conv_37_forward(x_nchw, weight, mask):
    """Forward pass of Conv_37. x_nchw: (N, Cin, H, W); weight/mask: (Cout, Cin, 3, 3)."""
    N, Cin, H, W = x_nchw.shape
    Cout = weight.shape[0]
    P = H * W

    nb = _pick_images_per_step(N, P)
    n_steps = N // nb
    rb = nb * P                     # matmul M-rows per grid step
    assert rb % 8 == 0, "pixel-block sublane count must be a multiple of 8"

    # Per-tap (Cin, Cout) weights, bf16 for the MXU (f32 accumulate in-kernel).
    w_masked = weight * mask
    w_taps = jnp.stack([w_masked[:, :, kh, kw].T for kh, kw in TAPS], axis=0)
    w_taps = w_taps.astype(jnp.bfloat16)                      # (3, Cin, Cout)

    # Precomputed 0/1 boundary masks over the flattened (i*W + j) pixel axis.
    #   tap (2,0) needs i < H-1 and j > 0 ; tap (0,2) needs i > 0 and j < W-1.
    ii = np.repeat(np.arange(H), W)
    jj = np.tile(np.arange(W), H)
    m_a = ((ii < H - 1) & (jj > 0)).astype(np.float32).reshape(P, 1)
    m_c = ((ii > 0) & (jj < W - 1)).astype(np.float32).reshape(P, 1)
    mask_a = jnp.asarray(np.tile(m_a, (nb, 1)))               # (rb, 1)
    mask_c = jnp.asarray(np.tile(m_c, (nb, 1)))               # (rb, 1)

    # NCHW -> (N*H*W, Cin): pixels on sublanes, channels on lanes.
    x_pix = jnp.transpose(x_nchw, (0, 2, 3, 1)).reshape(N * P, Cin)

    def kernel(x_ref, w_ref, ma_ref, mc_ref, o_ref):
        # x_ref : (rb, Cin) f32     pixel-major activation slab (nb images)
        # w_ref : (3, Cin, Cout) bf16  per-tap weights
        # ma/mc : (rb, 1) f32       0/1 boundary masks for the shifted taps
        # o_ref : (rb, Cout) f32
        x = x_ref[...]
        r = x.shape[0]
        # Row p of xa holds x[p + (W-1)]  (= x[i+1, j-1]); wraps are masked.
        xa = pltpu.roll(x, shift=r - (W - 1), axis=0) * ma_ref[...]
        # Row p of xc holds x[p - (W-1)]  (= x[i-1, j+1]); wraps are masked.
        xc = pltpu.roll(x, shift=W - 1, axis=0) * mc_ref[...]

        acc = jnp.dot(x.astype(jnp.bfloat16), w_ref[1],
                      preferred_element_type=jnp.float32)
        acc += jnp.dot(xa.astype(jnp.bfloat16), w_ref[0],
                       preferred_element_type=jnp.float32)
        acc += jnp.dot(xc.astype(jnp.bfloat16), w_ref[2],
                       preferred_element_type=jnp.float32)
        o_ref[...] = acc.astype(o_ref.dtype)

    out_pix = pl.pallas_call(
        kernel,
        out_shape=jax.ShapeDtypeStruct((N * P, Cout), x_nchw.dtype),
        grid=(n_steps,),
        in_specs=[
            pl.BlockSpec((rb, Cin), lambda b: (b, 0)),
            pl.BlockSpec((3, Cin, Cout), lambda b: (0, 0, 0)),
            pl.BlockSpec((rb, 1), lambda b: (0, 0)),
            pl.BlockSpec((rb, 1), lambda b: (0, 0)),
        ],
        out_specs=pl.BlockSpec((rb, Cout), lambda b: (b, 0)),
        compiler_params=pltpu.CompilerParams(
            dimension_semantics=("parallel",)),
    )(x_pix, w_taps, mask_a, mask_c)

    # (N*H*W, Cout) -> (N, H, W, Cout) -> NCHW
    return jnp.transpose(out_pix.reshape(N, H, W, Cout), (0, 3, 1, 2))


if __name__ == "__main__":
    N, Cin, Cout, H, W = 2, 4, 8, 16, 16

    key = jax.random.PRNGKey(0)
    kx, kw = jax.random.split(key)
    x = jax.random.normal(kx, (N, Cin, H, W), dtype=jnp.float32)

    mask = jnp.asarray(get_mask_37(Cin, Cout))
    # Deterministic synthetic weight init; __init__ pre-multiplies by the mask.
    weight = jax.random.normal(kw, (Cout, Cin, 3, 3), dtype=jnp.float32) * mask

    out = jax.block_until_ready(conv_37_forward(x, weight, mask))
    assert out.shape == (N, Cout, H, W)

    # Reference: f32-precision conv on the bf16-rounded operands (the kernel
    # feeds the MXU bf16 operands with f32 accumulation), pad=1, stride=1.
    xq = x.astype(jnp.bfloat16).astype(jnp.float32)
    wq = (weight * mask).astype(jnp.bfloat16).astype(jnp.float32)
    ref = jax.lax.conv_general_dilated(
        xq, wq, window_strides=(1, 1), padding=((1, 1), (1, 1)),
        dimension_numbers=("NCHW", "OIHW", "NCHW"),
        precision=jax.lax.Precision.HIGHEST)
    np.testing.assert_allclose(np.asarray(out), np.asarray(ref),
                               rtol=1e-4, atol=1e-4)

    print("KERNEL_OK")
</pallas_src>

<mosaic_0001>
module attributes {stable_mosaic.version = 11 : i64} {
  func.func @kernel(%arg0: i32, %arg1: memref<256x4xf32, #tpu.memory_space<vmem>>, %arg2: memref<3x4x8xbf16, #tpu.memory_space<vmem>>, %arg3: memref<256x1xf32, #tpu.memory_space<vmem>>, %arg4: memref<256x1xf32, #tpu.memory_space<vmem>>, %arg5: memref<256x8xf32, #tpu.memory_space<vmem>>) attributes {dimension_semantics = [#tpu.dimension_semantics<parallel>], iteration_bounds = array<i64: 2>, scalar_prefetch = 0 : i64, scratch_operands = 0 : i64, tpu.core_type = #tpu.core_type<tc>, window_params = [{transform_indices = @transform_0, window_bounds = array<i64: 256, 4>}, {pipeline_mode = #tpu.pipeline_mode<synchronous>, transform_indices = @transform_1, window_bounds = array<i64: 3, 4, 8>}, {pipeline_mode = #tpu.pipeline_mode<synchronous>, transform_indices = @transform_2, window_bounds = array<i64: 256, 1>}, {pipeline_mode = #tpu.pipeline_mode<synchronous>, transform_indices = @transform_3, window_bounds = array<i64: 256, 1>}, {transform_indices = @transform_4, window_bounds = array<i64: 256, 8>}]} {
    %c0 = arith.constant 0 : index
    %c0_0 = arith.constant 0 : index
    %0 = vector.load %arg1[%c0, %c0_0] : memref<256x4xf32, #tpu.memory_space<vmem>>, vector<256x4xf32>
    %c241_i32 = arith.constant 241 : i32
    %1 = tpu.dynamic_rotate %0 by %c241_i32 dim 0 : vector<256x4xf32>, i32 -> vector<256x4xf32>
    %c0_1 = arith.constant 0 : index
    %c0_2 = arith.constant 0 : index
    %2 = vector.load %arg3[%c0_1, %c0_2] : memref<256x1xf32, #tpu.memory_space<vmem>>, vector<256x1xf32>
    %3 = vector.broadcast %2 : vector<256x1xf32> to vector<256x4xf32>
    %4 = arith.mulf %1, %3 : vector<256x4xf32>
    %c15_i32 = arith.constant 15 : i32
    %5 = tpu.dynamic_rotate %0 by %c15_i32 dim 0 : vector<256x4xf32>, i32 -> vector<256x4xf32>
    %c0_3 = arith.constant 0 : index
    %c0_4 = arith.constant 0 : index
    %6 = vector.load %arg4[%c0_3, %c0_4] : memref<256x1xf32, #tpu.memory_space<vmem>>, vector<256x1xf32>
    %7 = vector.broadcast %6 : vector<256x1xf32> to vector<256x4xf32>
    %8 = arith.mulf %5, %7 : vector<256x4xf32>
    %9 = arith.truncf %0 : vector<256x4xf32> to vector<256x4xbf16>
    %c1 = arith.constant 1 : index
    %c0_5 = arith.constant 0 : index
    %c0_6 = arith.constant 0 : index
    %10 = vector.load %arg2[%c1, %c0_5, %c0_6] : memref<3x4x8xbf16, #tpu.memory_space<vmem>>, vector<1x4x8xbf16>
    %11 = vector.shape_cast %10 : vector<1x4x8xbf16> to vector<4x8xbf16>
    %cst = arith.constant dense<0.000000e+00> : vector<256x8xf32>
    %12 = tpu.matmul %9, %11, %cst {dimension_numbers = #tpu.dot_dimension_numbers<[1], [0], [0], [1], [0, 0, 1, 1], [], []>} : vector<256x4xbf16>, vector<4x8xbf16>, vector<256x8xf32> -> vector<256x8xf32>
    %13 = arith.truncf %4 : vector<256x4xf32> to vector<256x4xbf16>
    %c0_7 = arith.constant 0 : index
    %c0_8 = arith.constant 0 : index
    %c0_9 = arith.constant 0 : index
    %14 = vector.load %arg2[%c0_7, %c0_8, %c0_9] : memref<3x4x8xbf16, #tpu.memory_space<vmem>>, vector<1x4x8xbf16>
    %15 = vector.shape_cast %14 : vector<1x4x8xbf16> to vector<4x8xbf16>
    %cst_10 = arith.constant dense<0.000000e+00> : vector<256x8xf32>
    %16 = tpu.matmul %13, %15, %cst_10 {dimension_numbers = #tpu.dot_dimension_numbers<[1], [0], [0], [1], [0, 0, 1, 1], [], []>} : vector<256x4xbf16>, vector<4x8xbf16>, vector<256x8xf32> -> vector<256x8xf32>
    %17 = arith.addf %12, %16 : vector<256x8xf32>
    %18 = arith.truncf %8 : vector<256x4xf32> to vector<256x4xbf16>
    %c2 = arith.constant 2 : index
    %c0_11 = arith.constant 0 : index
    %c0_12 = arith.constant 0 : index
    %19 = vector.load %arg2[%c2, %c0_11, %c0_12] : memref<3x4x8xbf16, #tpu.memory_space<vmem>>, vector<1x4x8xbf16>
    %20 = vector.shape_cast %19 : vector<1x4x8xbf16> to vector<4x8xbf16>
    %cst_13 = arith.constant dense<0.000000e+00> : vector<256x8xf32>
    %21 = tpu.matmul %18, %20, %cst_13 {dimension_numbers = #tpu.dot_dimension_numbers<[1], [0], [0], [1], [0, 0, 1, 1], [], []>} : vector<256x4xbf16>, vector<4x8xbf16>, vector<256x8xf32> -> vector<256x8xf32>
    %22 = arith.addf %17, %21 : vector<256x8xf32>
    %c0_14 = arith.constant 0 : index
    %c0_15 = arith.constant 0 : index
    %23 = vector.load %arg5[%c0_14, %c0_15] : memref<256x8xf32, #tpu.memory_space<vmem>>, vector<256x8xf32>
    tpu.vector_store %arg5[%c0_14, %c0_15], %22 {strides = array<i32>} : memref<256x8xf32, #tpu.memory_space<vmem>>, vector<256x8xf32>,
    return
  }
  func.func @transform_0(%arg0: i32) -> (i32, i32) {
    %c0_i32 = arith.constant 0 : i32
    %c0_i32_0 = arith.constant 0 : i32
    return %arg0, %c0_i32 : i32, i32
  }
  func.func @transform_1(%arg0: i32) -> (i32, i32, i32) {
    %c0_i32 = arith.constant 0 : i32
    %c0_i32_0 = arith.constant 0 : i32
    %c0_i32_1 = arith.constant 0 : i32
    %c0_i32_2 = arith.constant 0 : i32
    return %c0_i32, %c0_i32_0, %c0_i32_1 : i32, i32, i32
  }
  func.func @transform_2(%arg0: i32) -> (i32, i32) {
    %c0_i32 = arith.constant 0 : i32
    %c0_i32_0 = arith.constant 0 : i32
    %c0_i32_1 = arith.constant 0 : i32
    return %c0_i32, %c0_i32_0 : i32, i32
  }
  func.func @transform_3(%arg0: i32) -> (i32, i32) {
    %c0_i32 = arith.constant 0 : i32
    %c0_i32_0 = arith.constant 0 : i32
    %c0_i32_1 = arith.constant 0 : i32
    return %c0_i32, %c0_i32_0 : i32, i32
  }
  func.func @transform_4(%arg0: i32) -> (i32, i32) {
    %c0_i32 = arith.constant 0 : i32
    %c0_i32_0 = arith.constant 0 : i32
    return %arg0, %c0_i32 : i32, i32
  }
}

</mosaic_0001>

<bundles_post_ra>
// kernel: tpu_custom_call.1
= control target key start
LH: loop header
LB: loop body
LE: loop exit
PB: predicated region body
PF: predicated region fallthrough
CT: control target
= control target key end

     0   :  { %s1520_s15 = smov 0   ;;  %s2304_s0 = inlined_call_operand.vmem [shape: f32[512,4], index: 0, kind: input, shape index: {}]   ;;  %s2305_s1 = inlined_call_operand.vmem [shape: bf16[3,4,8], index: 1, kind: input, shape index: {}]   ;;  %s2306_s2 = inlined_call_operand.vmem [shape: f32[256,1], index: 2, kind: input, shape index: {}]   ;;  %s2307_s3 = inlined_call_operand.vmem [shape: f32[256,1], index: 3, kind: input, shape index: {}]   ;;  %s2308_s4 = inlined_call_operand.vmem [shape: f32[512,8], index: 4, kind: output, shape index: {}]  }
   0x1 LB: > { %s1410_s16 = sadd.s32 4294967295, %s1492_s15   ;;  %p1414_p0 = scmp.ge.s32.totalorder %s1492_s15, 1  ;;  %s1492_s15 = sphi %s1520_s15, %s14_s15  }
   0x2   : > { %p163_p1 = scmp.lt.s32.totalorder %s1492_s15, 3 }
   0x4   : > { %p164_p2 = pnand %p1414_p0, %p163_p1 }
   0x5   : > { %s1415_s29 = sshll.u32 (!%p164_p2), %s1410_s16, 5 }
   0x6   : > { %167 = sbr.rel (%p164_p2) target bundleno = 468 (0x1d4), region = 36  ;;  %p190_p3 = scmp.lt.s32.totalorder (!%p164_p2), %s1415_s29, 63 }
   0xb   : > { %v325_v0 = vld [vmem:[%s2306_s2 + $0xc0] sm:$0xff]  ;;  %v303_v1 = vld [vmem:[%s2306_s2 + $0x10] sm:$0xff]  ;;  %v1494_v3 = vmov 0   ;;  %v326_v4 = vld [vmem:[%s2306_s2 + $0xc8] sm:$0xff]  ;;  %s2310_s29 = smov (!%p190_p3, %s1415_s29), 63  ;;  %v266_v34 = vlaneseq  ;;  %vm898_vm0 = vcmask 1041408  }
   0xc   : > { %v301_v2 = vld [vmem:[%s2306_s2] sm:$0xff]  ;;  %1485 = vset.pattern.permute.xlu2 %v1494_v3  ;;  %1484 = vset.pattern.permute.xlu1 %v1494_v3  ;;  %v304_v5 = vld [vmem:[%s2306_s2 + $0x18] sm:$0xff]  ;;  %v302_v6 = vld [vmem:[%s2306_s2 + $0x8] sm:$0xff]  ;;  %s1416_s16 = sshll.u32 %s2310_s29, 3  ;;  %vm849_vm2 = vcmask 31744   ;;  %vm1321_vm4 = vcmask 64512  }
   0xd   : > { %1483 = vset.pattern.permute.xlu0 %v1494_v3  ;;  %455 = vperm.xlu2 %1485, %v325_v0   ;;  %v327_v7 = vld [vmem:[%s2306_s2 + $0xd0] sm:$0xff]  ;;  %v591_v8 = vld [vmem:[%s2307_s3 + $0x8] sm:$0xff]  ;;  %v590_v9 = vld [vmem:[%s2307_s3] sm:$0xff]  ;;  %s1640_s14 = scalar_lea.vmem %s2304_s0, %s1416_s16  ;;  %v1658_v42 = vshrl.u32 %v266_v34, 7  ;;  %s2129_s18 = scalar_lea.vmem %s2308_s4, %s1416_s16 }
   0xe   : > { %345 = vperm.xlu1 %1484, %v303_v1   ;;  %335 = vperm.xlu0 %1483, %v301_v2   ;;  %v593_v10 = vld [vmem:[%s2307_s3 + $0x18] sm:$0xff]  ;;  %v592_v11 = vld [vmem:[%s2307_s3 + $0x10] sm:$0xff]  ;;  %v594_v13 = vld [vmem:[%s2307_s3 + $0x20] sm:$0xff] }
   0xf   : > { %v328_v12 = vld [vmem:[%s2306_s2 + $0xd8] sm:$0xff]  ;;  %v330_v14 = vld [vmem:[%s2306_s2 + $0xe8] sm:$0xff]  ;;  %v329_v15 = vld [vmem:[%s2306_s2 + $0xe0] sm:$0xff]  ;;  %vm268_vm1 = vcmp.lt.s32.totalorder %v1658_v42, 1  ;;  %vm557_vm3 = vcmp.lt.s32.totalorder %v1658_v42, 7 }
  0x10   : > { %v306_v16 = vld [vmem:[%s2306_s2 + $0x28] sm:$0xff]  ;;  %v305_v17 = vld [vmem:[%s2306_s2 + $0x20] sm:$0xff]  ;;  %v596_v19 = vld [vmem:[%s2307_s3 + $0x30] sm:$0xff] }
  0x11   : > { %v595_v18 = vld [vmem:[%s2307_s3 + $0x28] sm:$0xff]  ;;  %v332_v20 = vld [vmem:[%s2306_s2 + $0xf8] sm:$0xff]  ;;  %v331_v21 = vld [vmem:[%s2306_s2 + $0xf0] sm:$0xff] }
  0x12   : > { %v308_v22 = vld [vmem:[%s2306_s2 + $0x38] sm:$0xff]  ;;  %v307_v23 = vld [vmem:[%s2306_s2 + $0x30] sm:$0xff]  ;;  %v309_v25 = vld [vmem:[%s2306_s2 + $0x40] sm:$0xff] }
  0x13   : > { %v597_v24 = vld [vmem:[%s2307_s3 + $0x38] sm:$0xff]  ;;  %v599_v26 = vld [vmem:[%s2307_s3 + $0x48] sm:$0xff]  ;;  %v598_v27 = vld [vmem:[%s2307_s3 + $0x40] sm:$0xff] }
  0x14   : > { %v601_v28 = vld [vmem:[%s2307_s3 + $0x58] sm:$0xff]  ;;  %v600_v29 = vld [vmem:[%s2307_s3 + $0x50] sm:$0xff]  ;;  %v310_v30 = vld [vmem:[%s2306_s2 + $0x48] sm:$0xff] }
  0x15   : > { %460 = vperm.xlu2 %1485, %v326_v4   ;;  %v602_v31 = vld [vmem:[%s2307_s3 + $0x60] sm:$0xff]  ;;  %v312_v32 = vld [vmem:[%s2306_s2 + $0x58] sm:$0xff]  ;;  %v311_v33 = vld [vmem:[%s2306_s2 + $0x50] sm:$0xff] }
  0x16   : > { %350 = vperm.xlu1 %1484, %v304_v5   ;;  %340 = vperm.xlu0 %1483, %v302_v6   ;;  %v848_v35 = vld [vmem:[%s2305_s1] sm:$0x3]  ;;  %v314_v37 = vld [vmem:[%s2306_s2 + $0x68] sm:$0xff]  ;;  %v1656_v41 = vld [vmem:[%s1640_s14 + $0xd0] sm:$0xff] }
  0x17   : > { %v900_v36 = vsel %vm898_vm0, %v848_v35, 0  ;;  %v313_v38 = vld [vmem:[%s2306_s2 + $0x60] sm:$0xff]  ;;  %v603_v39 = vld [vmem:[%s2307_s3 + $0x68] sm:$0xff]  ;;  %v1661_v43 = vld [vmem:[%s1640_s14 + $0xd8] sm:$0xff]  ;;  %v260_v46 = vrot.slane %v1656_v41, 7 }
  0x18   : > { %1471 = vmatpush.bf16.msra.mxu3 %v900_v36  ;;  %909 = vmatpush.bf16.msra.mxu0 %v900_v36  ;;  %v1653_v40 = vld [vmem:[%s1640_s14 + $0xc8] sm:$0xff]  ;;  %v1419_v47 = vld [vmem:[%s2305_s1 + $0x2] sm:$0x3]  ;;  %v261_v48 = vrot.slane %v1661_v43, 7  ;;  %v315_v50 = vld [vmem:[%s2306_s2 + $0x70] sm:$0xff] }
  0x19   : > { %v259_v45 = vrot.slane %v1653_v40, 7  ;;  %v1040_v49 = vsel %vm898_vm0, %v1419_v47, 0  ;;  %v1675_v51 = vld [vmem:[%s1640_s14 + $0x8] sm:$0xff]  ;;  %v1678_v52 = vld [vmem:[%s1640_s14] sm:$0xff]  ;;  %v605_v54 = vld [vmem:[%s2307_s3 + $0x78] sm:$0xff] }
  0x1a   : > { %1049 = vmatpush.bf16.msra.mxu1 %v1040_v49  ;;  %v604_v55 = vld [vmem:[%s2307_s3 + $0x70] sm:$0xff]  ;;  %v814_v56 = vpack.c.bf16 %v1675_v51, %v1678_v52  ;;  %v273_v57 = vsel %vm268_vm1, %v260_v46, %v261_v48  ;;  %v1452_v61 = vld [vmem:[%s2305_s1 + $0x4] sm:$0x3]  ;;  %v607_v0 = vld [vmem:[%s2307_s3 + $0x88] sm:$0xff] }
  0x1b   : > { %v274_v53 = vsel %vm268_vm1, %v259_v45, %v260_v46  ;;  %v1198_v62 = vsel %vm898_vm0, %v1452_v61, 0  ;;  %v606_v1 = vld [vmem:[%s2307_s3 + $0x80] sm:$0xff]  ;;  %v316_v2 = vld [vmem:[%s2306_s2 + $0x78] sm:$0xff]  ;;  %v1715_v4 = vld [vmem:[%s1640_s14 + $0x10] sm:$0xff] }
  0x1c   : > { %1472 = vmatpush.bf16.msrb.mxu3 %v1040_v49  ;;  %1207 = vmatpush.bf16.msra.mxu2 %v1198_v62  ;;  %v317_v3 = vld [vmem:[%s2306_s2 + $0x80] sm:$0xff]  ;;  %v1718_v5 = vld [vmem:[%s1640_s14 + $0x18] sm:$0xff]  ;;  %v615_v6 = vld [vmem:[%s2307_s3 + $0xc8] sm:$0xff] }
  0x1d   : > { %465 = vperm.xlu2 %1485, %v327_v7   ;;  %1436 = vmatmul.msk.bf16.vlgmr.msra.gmra.mxu1 %vm849_vm2, %v814_v56  ;;  %v614_v7 = vld [vmem:[%s2307_s3 + $0xc0] sm:$0xff]  ;;  %v617_v34 = vld [vmem:[%s2307_s3 + $0xd8] sm:$0xff]  ;;  %v616_v35 = vld [vmem:[%s2307_s3 + $0xd0] sm:$0xff] }
  0x1e   : > { %629 = vperm.xlu1 %1484, %v591_v8   ;;  %624 = vperm.xlu0 %1483, %v590_v9   ;;  %v815_v8 = vpack.c.bf16 %v1718_v5, %v1715_v4  ;;  %v611_v56 = vld [vmem:[%s2307_s3 + $0xa8] sm:$0xff] }
  0x25   : > { %639 = vperm.xlu2 %1485, %v593_v10  }
  0x26   : > { %634 = vperm.xlu1 %1484, %v592_v11   ;;  %470 = vperm.xlu0 %1483, %v328_v12   ;;  %v235_v12 = vrot.slane %v1675_v51, 7 }
  0x2d   : > { %644 = vperm.xlu2 %1485, %v594_v13   ;;  %1437 = vmatmul.msk.bf16.gmra.mxu1 %vm849_vm2, %v815_v8  ;;  %v236_v13 = vrot.slane %v1715_v4, 7 }
  0x2e   : > { %480 = vperm.xlu1 %1484, %v330_v14   ;;  %475 = vperm.xlu0 %1483, %v329_v15   ;;  %v609_v14 = vld [vmem:[%s2307_s3 + $0x98] sm:$0xff]  ;;  %v608_v15 = vld [vmem:[%s2307_s3 + $0x90] sm:$0xff] }
  0x35   : > { %360 = vperm.xlu2 %1485, %v306_v16   ;;  %v318_v16 = vld [vmem:[%s2306_s2 + $0x88] sm:$0xff] }
  0x36   : > { %355 = vperm.xlu1 %1484, %v305_v17   ;;  %649 = vperm.xlu0 %1483, %v595_v18   ;;  %v237_v17 = vrot.slane %v1718_v5, 7  ;;  %v298_v18 = vsel %vm268_vm1, %v235_v12, %v236_v13 }
  0x3d   : > { %654 = vperm.xlu2 %1485, %v596_v19   ;;  %v297_v19 = vsel %vm268_vm1, %v236_v13, %v237_v17  ;;  %v526_v13 = vrot.slane %v1675_v51, 1 }
  0x3e   : > { %490 = vperm.xlu1 %1484, %v332_v20   ;;  %485 = vperm.xlu0 %1483, %v331_v21   ;;  %v1752_v20 = vld [vmem:[%s1640_s14 + $0xf8] sm:$0xff]  ;;  %v1755_v21 = vld [vmem:[%s1640_s14 + $0xf0] sm:$0xff] }
  0x45   : > { %370 = vperm.xlu2 %1485, %v308_v22  }
  0x46   : > { %365 = vperm.xlu1 %1484, %v307_v23   ;;  %659 = vperm.xlu0 %1483, %v597_v24  }
  0x4d   : > { %375 = vperm.xlu2 %1485, %v309_v25  }
  0x4e   : > { %669 = vperm.xlu1 %1484, %v599_v26   ;;  %664 = vperm.xlu0 %1483, %v598_v27   ;;  %v1758_v26 = vld [vmem:[%s1640_s14 + $0x20] sm:$0xff]  ;;  %v319_v27 = vld [vmem:[%s2306_s2 + $0x90] sm:$0xff] }
  0x55   : > { %679 = vperm.xlu2 %1485, %v601_v28   ;;  %v525_v28 = vrot.slane %v1678_v52, 1 }
  0x56   : > { %674 = vperm.xlu1 %1484, %v600_v29   ;;  %380 = vperm.xlu0 %1483, %v310_v30   ;;  %v556_v29 = vrot.slane %v1752_v20, 1  ;;  %v555_v30 = vrot.slane %v1755_v21, 1 }
  0x5d   : > { %684 = vperm.xlu2 %1485, %v602_v31  }
  0x5e   : > { %390 = vperm.xlu1 %1484, %v312_v32   ;;  %385 = vperm.xlu0 %1483, %v311_v33   ;;  %v1769_v32 = vld [vmem:[%s1640_s14 + $0x28] sm:$0xff] }
  0x5f   : > { %v816_v36 = vpack.c.bf16 %v1769_v32, %v1758_v26  ;;  %v239_v46 = vrot.slane %v1769_v32, 7 }
  0x61   : > { %1438 = vmatmul.msk.bf16.gmra.mxu1 %vm849_vm2, %v816_v36 }
  0x65   : > { %400 = vperm.xlu2 %1485, %v314_v37   ;;  %v589_v37 = vsel %vm557_vm3, %v556_v29, %v525_v28 }
  0x66   : > { %395 = vperm.xlu1 %1484, %v313_v38   ;;  %689 = vperm.xlu0 %1483, %v603_v39   ;;  %v558_v38 = vsel %vm557_vm3, %v555_v30, %v556_v29  ;;  %v1788_v39 = vld [vmem:[%s1640_s14 + $0xe0] sm:$0xff] }
  0x67   : > { %v456_v44 = vpop.permute.xlu2 %455 }
  0x68   : > { %v517_v58 = vmul.f32 %v456_v44, %v274_v53  ;;  %v1791_v44 = vld [vmem:[%s1640_s14 + $0xe8] sm:$0xff] }
  0x6d   : > { %405 = vperm.xlu2 %1485, %v315_v50  }
  0x6e   : > { %699 = vperm.xlu1 %1484, %v605_v54   ;;  %694 = vperm.xlu0 %1483, %v604_v55   ;;  %v262_v54 = vrot.slane %v1788_v39, 7  ;;  %v238_v55 = vrot.slane %v1758_v26, 7 }
  0x6f   : > { %v461_v59 = vpop.permute.xlu2 %460 }
  0x70   : > { %v518_v60 = vmul.f32 %v461_v59, %v273_v57  ;;  %v263_v57 = vrot.slane %v1791_v44, 7  ;;  %v610_v59 = vld [vmem:[%s2307_s3 + $0xa0] sm:$0xff]  ;;  %v295_v61 = vsel %vm268_vm1, %v238_v55, %v239_v46 }
  0x72   : > { %v844_v63 = vpack.c.bf16 %v518_v60, %v517_v58  ;;  %v320_v60 = vld [vmem:[%s2306_s2 + $0x98] sm:$0xff] }
  0x74   : > { %1432 = vmatmul.msk.bf16.vlgmr.msra.gmra.mxu3 %vm849_vm2, %v844_v63  ;;  %v272_v63 = vsel %vm268_vm1, %v261_v48, %v262_v54  ;;  %v527_v48 = vrot.slane %v1715_v4, 1  ;;  %v618_v4 = vld [vmem:[%s2307_s3 + $0xe0] sm:$0xff] }
  0x75   : > { %709 = vperm.xlu2 %1485, %v607_v0   ;;  %1473 = vmatpush.bf16.msra.mxu3 %v1198_v62  ;;  %v296_v0 = vsel %vm268_vm1, %v237_v17, %v238_v55 }
  0x76   : > { %704 = vperm.xlu1 %1484, %v606_v1   ;;  %410 = vperm.xlu0 %1483, %v316_v2   ;;  %v271_v1 = vsel %vm268_vm1, %v262_v54, %v263_v57 }
  0x77   : > { %v1731_v11 = vpop.permute.xlu2 %465 }
  0x7d   : > { %415 = vperm.xlu2 %1485, %v317_v3  }
  0x7e   : > { %749 = vperm.xlu1 %1484, %v615_v6   ;;  %744 = vperm.xlu0 %1483, %v614_v7   ;;  %v519_v7 = vmul.f32 %v1731_v11, %v272_v63  ;;  %v619_v11 = vld [vmem:[%s2307_s3 + $0xe8] sm:$0xff]  ;;  %v529_v63 = vrot.slane %v1758_v26, 1 }
  0x7f   : > { %v1766_v31 = vpop.permute.xlu2 %639 }
  0x80   : > { %v1729_v9 = vpop.permute.xlu1 %345  ;;  %v336_v10 = vpop.permute.xlu0 %335 }
  0x81   : > { %v493_v24 = vmul.f32 %v336_v10, %v298_v18  ;;  %v495_v8 = vmul.f32 %v1729_v9, %v296_v0  ;;  %v321_v18 = vld [vmem:[%s2306_s2 + $0xa0] sm:$0xff]  ;;  %v588_v9 = vsel %vm557_vm3, %v525_v28, %v526_v13  ;;  %v265_v28 = vrot.slane %v1752_v20, 7 }
  0x82   : > { %v1878_v0 = vld [vmem:[%s1640_s14 + $0x40] sm:$0xff] }
  0x85   : > { %719 = vperm.xlu2 %1485, %v609_v14   ;;  %v1827_v14 = vld [vmem:[%s1640_s14 + $0x30] sm:$0xff] }
  0x86   : > { %714 = vperm.xlu1 %1484, %v608_v15   ;;  %420 = vperm.xlu0 %1483, %v318_v16   ;;  %v1830_v16 = vld [vmem:[%s1640_s14 + $0x38] sm:$0xff] }
  0x87   : > { %v1811_v62 = vpop.permute.xlu2 %644 }
  0x88   : > { %v351_v22 = vpop.permute.xlu1 %350  ;;  %v341_v23 = vpop.permute.xlu0 %340 }
  0x89   : > { %v494_v25 = vmul.f32 %v341_v23, %v297_v19  ;;  %v496_v2 = vmul.f32 %v351_v22, %v295_v61  ;;  %v817_v19 = vpack.c.bf16 %v1830_v16, %v1827_v14  ;;  %v587_v22 = vsel %vm557_vm3, %v526_v13, %v527_v48 }
  0x8a   : > { %v528_v61 = vrot.slane %v1718_v5, 1  ;;  %v620_v5 = vld [vmem:[%s2307_s3 + $0xf0] sm:$0xff] }
  0x8b   : > { %v832_v33 = vpack.c.bf16 %v494_v25, %v493_v24  ;;  %v833_v15 = vpack.c.bf16 %v496_v2, %v495_v8  ;;  %1439 = vmatmul.msk.bf16.gmra.mxu1 %vm849_vm2, %v817_v19 }
  0x8c   : > { %v586_v8 = vsel %vm557_vm3, %v527_v48, %v528_v61 }
  0x8d   : > { %1420 = vmatmul.msk.bf16.vlgmr.msra.gmra.mxu0 %vm849_vm2, %v832_v33  ;;  %425 = vperm.xlu2 %1485, %v319_v27   ;;  %v264_v27 = vrot.slane %v1755_v21, 7  ;;  %v785_v33 = vmul.f32 %v1766_v31, %v587_v22  ;;  %v322_v31 = vld [vmem:[%s2306_s2 + $0xa8] sm:$0xff] }
  0x8e   : > { %759 = vperm.xlu1 %1484, %v617_v34   ;;  %754 = vperm.xlu0 %1483, %v616_v35   ;;  %v240_v34 = vrot.slane %v1827_v14, 7  ;;  %v241_v35 = vrot.slane %v1830_v16, 7 }
  0x8f   : > { %v361_v23 = vpop.permute.xlu2 %360 }
  0x90   : > { %v630_v47 = vpop.permute.xlu1 %629  ;;  %v625_v49 = vpop.permute.xlu0 %624 }
  0x91   : > { %v783_v50 = vmul.f32 %v630_v47, %v589_v37  ;;  %v782_v53 = vmul.f32 %v625_v49, %v558_v38  ;;  %v613_v37 = vld [vmem:[%s2307_s3 + $0xb8] sm:$0xff]  ;;  %v612_v38 = vld [vmem:[%s2307_s3 + $0xb0] sm:$0xff]  ;;  %v269_v47 = vsel %vm268_vm1, %v264_v27, %v265_v28  ;;  %v270_v49 = vsel %vm268_vm1, %v263_v57, %v264_v27 }
  0x92   : > { %v531_v27 = vrot.slane %v1827_v14, 1 }
  0x93   : > { %v1131_v58 = vpack.c.bf16 %v783_v50, %v782_v53  ;;  %v293_v50 = vsel %vm268_vm1, %v240_v34, %v241_v35  ;;  %v294_v53 = vsel %vm268_vm1, %v239_v46, %v240_v34  ;;  %v323_v46 = vld [vmem:[%s2306_s2 + $0xb0] sm:$0xff] }
  0x94   : > { %v1922_v34 = vld [vmem:[%s1640_s14 + $0x50] sm:$0xff] }
  0x95   : > { %1453 = vmatmul.msk.bf16.vlgmr.msra.gmra.mxu2 %vm849_vm2, %v1131_v58  ;;  %729 = vperm.xlu2 %1485, %v611_v56   ;;  %v498_v58 = vmul.f32 %v361_v23, %v293_v50 }
  0x96   : > { %724 = vperm.xlu1 %1484, %v610_v59   ;;  %430 = vperm.xlu0 %1483, %v320_v60  }
  0x97   : > { %v655_v59 = vpop.permute.xlu2 %654 }
  0x98   : > { %v635_v3 = vpop.permute.xlu1 %634  ;;  %v471_v6 = vpop.permute.xlu0 %470 }
  0x99   : > { %v520_v10 = vmul.f32 %v471_v6, %v271_v1  ;;  %v784_v24 = vmul.f32 %v635_v3, %v588_v9  ;;  %v1881_v1 = vld [vmem:[%s1640_s14 + $0x48] sm:$0xff]  ;;  %v621_v6 = vld [vmem:[%s2307_s3 + $0xf8] sm:$0xff] }
  0x9a   : > { %v818_v26 = vpack.c.bf16 %v1881_v1, %v1878_v0  ;;  %v243_v9 = vrot.slane %v1881_v1, 7 }
  0x9b   : > { %v845_v17 = vpack.c.bf16 %v520_v10, %v519_v7  ;;  %v1132_v36 = vpack.c.bf16 %v785_v33, %v784_v24  ;;  %v585_v7 = vsel %vm557_vm3, %v528_v61, %v529_v63  ;;  %v530_v33 = vrot.slane %v1769_v32, 1 }
  0x9c   : > { %1440 = vmatmul.msk.bf16.gmra.mxu1 %vm849_vm2, %v818_v26  ;;  %v1951_v26 = vld [vmem:[%s1640_s14 + $0x60] sm:$0xff] }
  0x9d   : > { %1421 = vmatmul.msk.bf16.gmra.mxu0 %vm849_vm2, %v833_v15  ;;  %1433 = vmatmul.msk.bf16.gmra.mxu3 %vm849_vm2, %v845_v17  ;;  %v234_v15 = vrot.slane %v1678_v52, 7  ;;  %v324_v52 = vld [vmem:[%s2306_s2 + $0xb8] sm:$0xff]  ;;  %v584_v32 = vsel %vm557_vm3, %v529_v63, %v530_v33  ;;  %v533_v63 = vrot.slane %v1878_v0, 1 }
  0x9e   : > { %435 = vperm.xlu2 %1485, %v321_v18   ;;  %769 = vperm.xlu1 %1484, %v619_v11   ;;  %v786_v18 = vmul.f32 %v1811_v62, %v586_v8  ;;  %v242_v11 = vrot.slane %v1878_v0, 7  ;;  %v1954_v8 = vld [vmem:[%s1640_s14 + $0x68] sm:$0xff] }
  0x9f   : > { %764 = vperm.xlu0 %1483, %v618_v4   ;;  %v371_v4 = vpop.permute.xlu2 %370  ;;  %v299_v48 = vsel %vm268_vm1, %v234_v15, %v235_v12  ;;  %v300_v22 = vsel %vm268_vm1, %v265_v28, %v234_v15  ;;  %v820_v0 = vpack.c.bf16 %v1954_v8, %v1951_v26 }
  0xa0   : > { %v481_v25 = vpop.permute.xlu1 %480  ;;  %v476_v29 = vpop.permute.xlu0 %475  ;;  %v291_v62 = vsel %vm268_vm1, %v242_v11, %v243_v9  ;;  %v292_v51 = vsel %vm268_vm1, %v241_v35, %v242_v11  ;;  %v583_v35 = vsel %vm557_vm3, %v530_v33, %v531_v27  ;;  %v247_v11 = vrot.slane %v1954_v8, 7 }
  0xa1   : > { %v522_v54 = vmul.f32 %v481_v25, %v269_v47  ;;  %v521_v55 = vmul.f32 %v476_v29, %v270_v49  ;;  %v500_v28 = vmul.f32 %v371_v4, %v291_v62 }
  0xa3   : > { %v846_v2 = vpack.c.bf16 %v522_v54, %v521_v55  ;;  %v244_v54 = vrot.slane %v1922_v34, 7 }
  0xa5   : > { %1454 = vmatmul.msk.bf16.gmra.mxu2 %vm849_vm2, %v1132_v36 }
  0xa6   : > { %739 = vperm.xlu2 %1485, %v613_v37   ;;  %734 = vperm.xlu1 %1484, %v612_v38   ;;  %v1925_v37 = vld [vmem:[%s1640_s14 + $0x58] sm:$0xff] }
  0xa7   : > { %440 = vperm.xlu0 %1483, %v322_v31   ;;  %v819_v47 = vpack.c.bf16 %v1925_v37, %v1922_v34  ;;  %v376_v49 = vpop.permute.xlu2 %375  ;;  %v245_v55 = vrot.slane %v1925_v37, 7 }
  0xa8   : > { %v356_v56 = vpop.permute.xlu1 %355  ;;  %v650_v57 = vpop.permute.xlu0 %649 }
  0xa9   : > { %v497_v60 = vmul.f32 %v356_v56, %v294_v53  ;;  %v787_v10 = vmul.f32 %v650_v57, %v585_v7  ;;  %v788_v53 = vmul.f32 %v655_v59, %v584_v32  ;;  %v290_v57 = vsel %vm268_vm1, %v243_v9, %v244_v54 }
  0xaa   : > { %v532_v59 = vrot.slane %v1830_v16, 1 }
  0xab   : > { %v834_v3 = vpack.c.bf16 %v498_v58, %v497_v60  ;;  %v1133_v19 = vpack.c.bf16 %v787_v10, %v786_v18  ;;  %v289_v58 = vsel %vm268_vm1, %v244_v54, %v245_v55  ;;  %v1944_v60 = vld [vmem:[%s1640_s14 + $0xc0] sm:$0xff]  ;;  %v246_v18 = vrot.slane %v1951_v26, 7 }
  0xac   : > { %1441 = vmatmul.msk.bf16.gmra.mxu1 %vm849_vm2, %v819_v47  ;;  %v826_v7 = vpack.c.bf16 %v1653_v40, %v1944_v60  ;;  %v581_v10 = vsel %vm557_vm3, %v532_v59, %v533_v63  ;;  %v582_v16 = vsel %vm557_vm3, %v531_v27, %v532_v59  ;;  %v536_v59 = vrot.slane %v1925_v37, 1 }
  0xad   : > { %1422 = vmatmul.msk.bf16.gmra.mxu0 %vm849_vm2, %v834_v3  ;;  %1434 = vmatmul.msk.bf16.gmra.mxu3 %vm849_vm2, %v846_v2 }
  0xae   : > { %445 = vperm.xlu2 %1485, %v323_v46   ;;  %779 = vperm.xlu1 %1484, %v621_v6   ;;  %v501_v46 = vmul.f32 %v376_v49, %v290_v57 }
  0xaf   : > { %774 = vperm.xlu0 %1483, %v620_v5   ;;  %v680_v61 = vpop.permute.xlu2 %679 }
  0xb0   : > { %v491_v13 = vpop.permute.xlu1 %490  ;;  %v486_v17 = vpop.permute.xlu0 %485 }
  0xb1   : > { %v524_v23 = vmul.f32 %v491_v13, %v299_v48  ;;  %v523_v24 = vmul.f32 %v486_v17, %v300_v22  ;;  %v287_v48 = vsel %vm268_vm1, %v246_v18, %v247_v11  ;;  %v288_v22 = vsel %vm268_vm1, %v245_v55, %v246_v18 }
  0xb3   : > { %v847_v36 = vpack.c.bf16 %v524_v23, %v523_v24  ;;  %v827_v24 = vpack.c.bf16 %v1661_v43, %v1656_v41 }
  0xb5   : > { %1455 = vmatmul.msk.bf16.gmra.mxu2 %vm849_vm2, %v1133_v19 }
  0xb7   : > { %450 = vperm.xlu0 %1483, %v324_v52   ;;  %v685_v4 = vpop.permute.xlu2 %684 }
  0xb8   : > { %v366_v12 = vpop.permute.xlu1 %365  ;;  %v660_v25 = vpop.permute.xlu0 %659 }
  0xb9   : > { %v499_v29 = vmul.f32 %v366_v12, %v292_v51  ;;  %v789_v14 = vmul.f32 %v660_v25, %v583_v35  ;;  %v534_v12 = vrot.slane %v1881_v1, 1  ;;  %v535_v25 = vrot.slane %v1922_v34, 1 }
  0xbb   : > { %v835_v38 = vpack.c.bf16 %v500_v28, %v499_v29  ;;  %v1134_v56 = vpack.c.bf16 %v789_v14, %v788_v53  ;;  %v1977_v28 = vld [vmem:[%s1640_s14 + $0x70] sm:$0xff]  ;;  %v1980_v29 = vld [vmem:[%s1640_s14 + $0x78] sm:$0xff]  ;;  %v579_v1 = vsel %vm557_vm3, %v534_v12, %v535_v25  ;;  %v578_v37 = vsel %vm557_vm3, %v535_v25, %v536_v59 }
  0xbc   : > { %1442 = vmatmul.msk.bf16.gmra.mxu1 %vm849_vm2, %v820_v0  ;;  %v793_v47 = vmul.f32 %v680_v61, %v579_v1  ;;  %v248_v49 = vrot.slane %v1977_v28, 7  ;;  %v249_v32 = vrot.slane %v1980_v29, 7  ;;  %v828_v61 = vpack.c.bf16 %v1791_v44, %v1788_v39 }
  0xbd   : > { %1423 = vmatmul.msk.bf16.gmra.mxu0 %vm849_vm2, %v835_v38  ;;  %1435 = vmatmul.msk.bf16.gmra.mxu3 %vm849_vm2, %v847_v36  ;;  %v580_v36 = vsel %vm557_vm3, %v533_v63, %v534_v12  ;;  %v821_v38 = vpack.c.bf16 %v1980_v29, %v1977_v28  ;;  %v2003_v63 = vld [vmem:[%s1640_s14 + $0x80] sm:$0xff]  ;;  %v794_v0 = vmul.f32 %v685_v4, %v578_v37  ;;  %v2040_v12 = vld [vmem:[%s1640_s14 + $0x98] sm:$0xff] }
  0xbe   : > { %v285_v54 = vsel %vm268_vm1, %v248_v49, %v249_v32  ;;  %v541_v37 = vrot.slane %v2003_v63, 1 }
  0xbf   : > { %v401_v27 = vpop.permute.xlu2 %400 }
  0xc0   : > { %v670_v31 = vpop.permute.xlu1 %669  ;;  %v665_v50 = vpop.permute.xlu0 %664 }
  0xc1   : > { %v791_v13 = vmul.f32 %v670_v31, %v581_v10  ;;  %v790_v15 = vmul.f32 %v665_v50, %v582_v16  ;;  %v286_v50 = vsel %vm268_vm1, %v247_v11, %v248_v49 }
  0xc3   : > { %v1135_v19 = vpack.c.bf16 %v791_v13, %v790_v15  ;;  %v250_v13 = vrot.slane %v2003_v63, 7 }
  0xc5   : > { %1456 = vmatmul.msk.bf16.gmra.mxu2 %vm849_vm2, %v1134_v56  ;;  %v537_v56 = vrot.slane %v1951_v26, 1 }
  0xc7   : > { %v406_v53 = vpop.permute.xlu2 %405 }
  0xc8   : > { %v675_v2 = vpop.permute.xlu1 %674  ;;  %v381_v3 = vpop.permute.xlu0 %380 }
  0xc9   : > { %v502_v6 = vmul.f32 %v381_v3, %v289_v58  ;;  %v792_v34 = vmul.f32 %v675_v2, %v580_v36  ;;  %v506_v58 = vmul.f32 %v401_v27, %v285_v54  ;;  %v2006_v2 = vld [vmem:[%s1640_s14 + $0x88] sm:$0xff]  ;;  %v2051_v36 = vld [vmem:[%s1640_s14 + $0xb8] sm:$0xff] }
  0xca   : > { %v251_v15 = vrot.slane %v2006_v2, 7 }
  0xcb   : > { %v836_v5 = vpack.c.bf16 %v502_v6, %v501_v46  ;;  %v1136_v14 = vpack.c.bf16 %v793_v47, %v792_v34  ;;  %v2008_v46 = vpop.f32.mrf.mxu1  ;;  %v577_v6 = vsel %vm557_vm3, %v536_v59, %v537_v56  ;;  %v548_v34 = vrot.slane %v2051_v36, 1 }
  0xcc   : > { %1443 = vmatmul.msk.bf16.gmra.mxu1 %vm849_vm2, %v821_v38  ;;  %v283_v11 = vsel %vm268_vm1, %v250_v13, %v251_v15  ;;  %v2054_v38 = vld [vmem:[%s1640_s14 + $0xb0] sm:$0xff]  ;;  %v549_v47 = vrot.slane %v1944_v60, 1 }
  0xcd   : > { %1424 = vmatmul.msk.bf16.gmra.mxu0 %vm849_vm2, %v836_v5  ;;  %1448 = vmatmul.msk.bf16.vlgmr.msrb.gmra.mxu3 %vm849_vm2, %v826_v7  ;;  %v822_v7 = vpack.c.bf16 %v2006_v2, %v2003_v63  ;;  %v547_v49 = vrot.slane %v2054_v38, 1 }
  0xcf   : > { %v2020_v26 = vpop.permute.xlu2 %709 }
  0xd0   : > { %v391_v17 = vpop.permute.xlu1 %390  ;;  %v386_v9 = vpop.permute.xlu0 %385 }
  0xd1   : > { %v504_v52 = vmul.f32 %v391_v17, %v287_v48  ;;  %v503_v62 = vmul.f32 %v386_v9, %v288_v22  ;;  %v284_v9 = vsel %vm268_vm1, %v249_v32, %v250_v13  ;;  %v538_v48 = vrot.slane %v1954_v8, 1 }
  0xd2   : > { %v539_v22 = vrot.slane %v1977_v28, 1 }
  0xd3   : > { %v837_v33 = vpack.c.bf16 %v504_v52, %v503_v62  ;;  %v2025_v18 = vpop.f32.mrf.mxu1  ;;  %v507_v52 = vmul.f32 %v406_v53, %v284_v9  ;;  %v576_v8 = vsel %vm557_vm3, %v537_v56, %v538_v48 }
  0xd5   : > { %1457 = vmatmul.msk.bf16.gmra.mxu2 %vm849_vm2, %v1135_v19 }
  0xd7   : > { %v416_v62 = vpop.permute.xlu2 %415 }
  0xd8   : > { %v690_v51 = vpop.permute.xlu0 %689  ;;  %v396_v23 = vpop.permute.xlu1 %395 }
  0xd9   : > { %v505_v55 = vmul.f32 %v396_v23, %v286_v50  ;;  %v795_v10 = vmul.f32 %v690_v51, %v577_v6  ;;  %v829_v23 = vpack.c.bf16 %v1752_v20, %v1755_v21  ;;  %v253_v50 = vrot.slane %v2040_v12, 7 }
  0xdb   : > { %v838_v3 = vpack.c.bf16 %v506_v58, %v505_v55  ;;  %v1137_v17 = vpack.c.bf16 %v795_v10, %v794_v0  ;;  %v2042_v27 = vpop.f32.mrf.mxu1  ;;  %v566_v55 = vsel %vm557_vm3, %v547_v49, %v548_v34  ;;  %v2084_v0 = vld [vmem:[%s1640_s14 + $0xa0] sm:$0xff] }
  0xdc   : > { %1444 = vmatmul.msk.bf16.gmra.mxu1 %vm849_vm2, %v822_v7  ;;  %v540_v7 = vrot.slane %v1980_v29, 1 }
  0xdd   : > { %1425 = vmatmul.msk.bf16.gmra.mxu0 %vm849_vm2, %v837_v33  ;;  %1449 = vmatmul.msk.bf16.gmra.mxu3 %vm849_vm2, %v827_v24  ;;  %v2037_v24 = vld [vmem:[%s1640_s14 + $0x90] sm:$0xff]  ;;  %v575_v33 = vsel %vm557_vm3, %v538_v48, %v539_v22 }
  0xde   : > { %v823_v28 = vpack.c.bf16 %v2040_v12, %v2037_v24  ;;  %v573_v29 = vsel %vm557_vm3, %v540_v7, %v541_v37 }
  0xdf   : > { %v2066_v54 = vpop.permute.xlu2 %719 }
  0xe0   : > { %v695_v35 = vpop.permute.xlu0 %694  ;;  %v700_v31 = vpop.permute.xlu1 %699 }
  0xe1   : > { %v797_v20 = vmul.f32 %v700_v31, %v575_v33  ;;  %v796_v1 = vmul.f32 %v695_v35, %v576_v8  ;;  %v565_v35 = vsel %vm557_vm3, %v548_v34, %v549_v47 }
  0xe3   : > { %v1138_v31 = vpack.c.bf16 %v797_v20, %v796_v1 }
  0xe5   : > { %1458 = vmatmul.msk.bf16.gmra.mxu2 %vm849_vm2, %v1136_v14  ;;  %v252_v14 = vrot.slane %v2037_v24, 7 }
  0xe7   : > { %v281_v56 = vsel %vm268_vm1, %v252_v14, %v253_v50  ;;  %v282_v58 = vsel %vm268_vm1, %v251_v15, %v252_v14 }
  0xe8   : > { %v411_v57 = vpop.permute.xlu0 %410  ;;  %v2014_v5 = vpop.permute.xlu1 %704  ;;  %v509_v6 = vmul.f32 %v416_v62, %v282_v58  ;;  %v551_v62 = vrot.slane %v1656_v41, 1 }
  0xe9   : > { %v508_v19 = vmul.f32 %v411_v57, %v283_v11  ;;  %v2076_v57 = vpop.f32.mrf.mxu1 }
  0xeb   : > { %v839_v25 = vpack.c.bf16 %v508_v19, %v507_v52  ;;  %v574_v19 = vsel %vm557_vm3, %v539_v22, %v540_v7  ;;  %v550_v22 = vrot.slane %v1653_v40, 1 }
  0xec   : > { %1445 = vmatmul.msk.bf16.gmra.mxu1 %vm849_vm2, %v823_v28  ;;  %v798_v52 = vmul.f32 %v2014_v5, %v574_v19 }
  0xed   : > { %1426 = vmatmul.msk.bf16.gmra.mxu0 %vm849_vm2, %v838_v3  ;;  %1450 = vmatmul.msk.bf16.gmra.mxu3 %vm849_vm2, %v828_v61  ;;  %v563_v28 = vsel %vm557_vm3, %v550_v22, %v551_v62  ;;  %v564_v5 = vsel %vm557_vm3, %v549_v47, %v550_v22 }
  0xf0   : > { %v745_v16 = vpop.permute.xlu0 %744  ;;  %v750_v4 = vpop.permute.xlu1 %749 }
  0xf1   : > { %v807_v61 = vmul.f32 %v750_v4, %v565_v35  ;;  %v806_v59 = vmul.f32 %v745_v16, %v566_v55  ;;  %v426_v4 = vpop.permute.xlu2 %425  ;;  %v2099_v63 = vpop.f32.mrf.mxu1 }
  0xf3   : > { %v1143_v13 = vpack.c.bf16 %v807_v61, %v806_v59  ;;  %v543_v59 = vrot.slane %v2037_v24, 1 }
  0xf5   : > { %1459 = vmatmul.msk.bf16.gmra.mxu2 %vm849_vm2, %v1137_v17  ;;  %v2087_v17 = vld [vmem:[%s1640_s14 + $0xa8] sm:$0xff] }
  0xf6   : > { %v824_v16 = vpack.c.bf16 %v2087_v17, %v2084_v0 }
  0xf7   : > { %v2093_v48 = vpop.f32.mrf.mxu3 }
  0xf8   : > { %v421_v51 = vpop.permute.xlu0 %420  ;;  %v2062_v32 = vpop.permute.xlu1 %714 }
  0xf9   : > { %v510_v3 = vmul.f32 %v421_v51, %v281_v56  ;;  %v799_v51 = vmul.f32 %v2020_v26, %v573_v29  ;;  %v2119_v34 = vpop.permute.xlu2 %729 }
  0xfb   : > { %v840_v11 = vpack.c.bf16 %v510_v3, %v509_v6  ;;  %v1139_v8 = vpack.c.bf16 %v799_v51, %v798_v52  ;;  %v256_v52 = vrot.slane %v2054_v38, 7 }
  0xfc   : > { %1446 = vmatmul.msk.bf16.gmra.mxu1 %vm849_vm2, %v824_v16 }
  0xfd   : > { %1427 = vmatmul.msk.bf16.gmra.mxu0 %vm849_vm2, %v839_v25  ;;  %1451 = vmatmul.msk.bf16.gmra.mxu3 %vm849_vm2, %v829_v23  ;;  %v254_v23 = vrot.slane %v2084_v0, 7  ;;  %v255_v25 = vrot.slane %v2087_v17, 7 }
  0xff   : > { %v279_v20 = vsel %vm268_vm1, %v254_v23, %v255_v25  ;;  %v280_v41 = vsel %vm268_vm1, %v253_v50, %v254_v23  ;;  %v2122_v56 = vpop.f32.mrf.mxu3  ;;  %v2131_v50 = vpop.f32.mrf.mxu1 }
 0x100   : > { %v755_v53 = vpop.permute.xlu0 %754  ;;  %v760_v9 = vpop.permute.xlu1 %759  ;;  %v511_v58 = vmul.f32 %v426_v4, %v280_v41 }
 0x101   : > { %v809_v14 = vmul.f32 %v760_v9, %v563_v28  ;;  %v553_v9 = vrot.slane %v1788_v39, 1  ;;  %v436_v4 = vpop.permute.xlu2 %435 }
 0x105   : > { %1460 = vmatmul.msk.bf16.gmra.mxu2 %vm849_vm2, %v1138_v31  ;;  %v808_v31 = vmul.f32 %v755_v53, %v564_v5  ;;  %v542_v53 = vrot.slane %v2006_v2, 1 }
 0x107   : > { %v1144_v3 = vpack.c.bf16 %v809_v14, %v808_v31  ;;  %v572_v7 = vsel %vm557_vm3, %v541_v37, %v542_v53  ;;  %v571_v2 = vsel %vm557_vm3, %v542_v53, %v543_v59  ;;  %v544_v31 = vrot.slane %v2040_v12, 1 }
 0x108   : > { %v431_v15 = vpop.permute.xlu0 %430  ;;  %v2114_v1 = vpop.permute.xlu1 %724  ;;  %v800_v24 = vmul.f32 %v2062_v32, %v572_v7  ;;  %v801_v16 = vmul.f32 %v2066_v54, %v571_v2  ;;  %v257_v32 = vrot.slane %v2051_v36, 7 }
 0x109   : > { %v512_v35 = vmul.f32 %v431_v15, %v279_v20  ;;  %v2155_v23 = vpop.f32.mrf.mxu1  ;;  %v740_v53 = vpop.permute.xlu2 %739 }
 0x10a   : > { %v911_v10 = vpop.f32.mrf.mxu0  ;;  %v277_v54 = vsel %vm268_vm1, %v256_v52, %v257_v32 }
 0x10b   : > { %v1052_v55 = vadd.f32 %v2008_v46, %v911_v10  ;;  %v841_v6 = vpack.c.bf16 %v512_v35, %v511_v58  ;;  %v825_v10 = vpack.c.bf16 %v2051_v36, %v2054_v38  ;;  %v278_v36 = vsel %vm268_vm1, %v255_v25, %v256_v52 }
 0x10c   : > { %v513_v41 = vmul.f32 %v436_v4, %v278_v36  ;;  %v545_v35 = vrot.slane %v2084_v0, 1 }
 0x10d   : > { %1428 = vmatmul.msk.bf16.gmra.mxu0 %vm849_vm2, %v840_v11  ;;  %1465 = vmatmul.msk.bf16.vlgmr.msra.gmra.mxu3 %vm849_vm2, %v1143_v13  ;;  %v552_v11 = vrot.slane %v1661_v43, 1  ;;  %v1140_v43 = vpack.c.bf16 %v801_v16, %v800_v24 }
 0x10e   : > { %1447 = vmatmul.msk.bf16.gmra.mxu1 %vm849_vm2, %v825_v10  ;;  %v569_v12 = vsel %vm557_vm3, %v544_v31, %v545_v35  ;;  %v258_v10 = vrot.slane %v1944_v60, 7 }
 0x10f   : > { %v561_v39 = vsel %vm557_vm3, %v552_v11, %v553_v9 }
 0x110   : > { %v770_v13 = vpop.permute.xlu1 %769  ;;  %v276_v21 = vsel %vm268_vm1, %v257_v32, %v258_v10 }
 0x111   : > { %v765_v26 = vpop.permute.xlu0 %764  ;;  %v446_v60 = vpop.permute.xlu2 %445 }
 0x112   : > { %v913_v33 = vpop.f32.mrf.mxu0  ;;  %v515_v40 = vmul.f32 %v446_v60, %v276_v21 }
 0x113   : > { %v1054_v37 = vadd.f32 %v2025_v18, %v913_v33  ;;  %v562_v18 = vsel %vm557_vm3, %v551_v62, %v552_v11  ;;  %v811_v33 = vmul.f32 %v770_v13, %v561_v39 }
 0x115   : > { %1461 = vmatmul.msk.bf16.gmra.mxu2 %vm849_vm2, %v1139_v8  ;;  %v810_v8 = vmul.f32 %v765_v26, %v562_v18  ;;  %v570_v26 = vsel %vm557_vm3, %v543_v59, %v544_v31  ;;  %v803_v59 = vmul.f32 %v2119_v34, %v569_v12  ;;  %v275_v34 = vsel %vm268_vm1, %v258_v10, %v259_v45 }
 0x116   : > { %v802_v0 = vmul.f32 %v2114_v1, %v570_v26  ;;  %v546_v45 = vrot.slane %v2087_v17, 1 }
 0x118   : > { %v1209_v47 = vpop.f32.mrf.mxu2  ;;  %v735_v62 = vpop.permute.xlu1 %734  ;;  %v1141_v13 = vpack.c.bf16 %v803_v59, %v802_v0  ;;  %v568_v32 = vsel %vm557_vm3, %v545_v35, %v546_v45 }
 0x119   : > { %v1289_v61 = vadd.f32 %v1209_v47, %v1052_v55  ;;  %v441_v19 = vpop.permute.xlu0 %440  ;;  %v804_v17 = vmul.f32 %v735_v62, %v568_v32 }
 0x11a   : > { %v916_v46 = vpop.f32.mrf.mxu0  ;;  %v514_v28 = vmul.f32 %v441_v19, %v277_v54 }
 0x11b   : > { %1322 = vst.msk [vmem:[%s2129_s18] sm:$0xff] %vm1321_vm4, %v1289_v61  ;;  %v1057_v5 = vadd.f32 %v2042_v27, %v916_v46  ;;  %v1145_v61 = vpack.c.bf16 %v811_v33, %v810_v8  ;;  %v1068_v27 = vpop.f32.mrf.mxu1  ;;  %v554_v46 = vrot.slane %v1791_v44, 1 }
 0x11c   : > { %v842_v25 = vpack.c.bf16 %v514_v28, %v513_v41 }
 0x11d   : > { %1429 = vmatmul.msk.bf16.gmra.mxu0 %vm849_vm2, %v841_v6  ;;  %1466 = vmatmul.msk.bf16.gmra.mxu3 %vm849_vm2, %v1144_v3  ;;  %v559_v1 = vsel %vm557_vm3, %v554_v46, %v555_v30  ;;  %v560_v44 = vsel %vm557_vm3, %v553_v9, %v554_v46 }
 0x120   : > { %v2150_v15 = vpop.f32.mrf.mxu3  ;;  %v1211_v29 = vpop.f32.mrf.mxu2 }
 0x121   : > { %v1290_v22 = vadd.f32 %v1211_v29, %v1054_v37  ;;  %v775_v55 = vpop.permute.xlu0 %774  ;;  %v780_v11 = vpop.permute.xlu1 %779 }
 0x122   : > { %v918_v51 = vpop.f32.mrf.mxu0  ;;  %v813_v30 = vmul.f32 %v780_v11, %v559_v1  ;;  %v812_v19 = vmul.f32 %v775_v55, %v560_v44 }
 0x123   : > { %1323 = vst.msk [vmem:[%s2129_s18 + $0x8] sm:$0xff] %vm1321_vm4, %v1290_v22  ;;  %v1059_v3 = vadd.f32 %v2076_v57, %v918_v51  ;;  %v1071_v37 = vpop.f32.mrf.mxu1 }
 0x124   : > { %v1146_v51 = vpack.c.bf16 %v813_v30, %v812_v19 }
 0x125   : > { %1462 = vmatmul.msk.bf16.gmra.mxu2 %vm849_vm2, %v1140_v43 }
 0x128   : > { %v2169_v20 = vpop.f32.mrf.mxu3  ;;  %v1214_v14 = vpop.f32.mrf.mxu2 }
 0x129   : > { %v1291_v47 = vadd.f32 %v1214_v14, %v1057_v5  ;;  %v451_v57 = vpop.permute.xlu0 %450 }
 0x12a   : > { %v921_v58 = vpop.f32.mrf.mxu0  ;;  %v516_v16 = vmul.f32 %v451_v57, %v275_v34 }
 0x12b   : > { %1324 = vst.msk [vmem:[%s2129_s18 + $0x10] sm:$0xff] %vm1321_vm4, %v1291_v47  ;;  %v1062_v9 = vadd.f32 %v2099_v63, %v921_v58  ;;  %v567_v63 = vsel %vm557_vm3, %v546_v45, %v547_v49  ;;  %v1073_v54 = vpop.f32.mrf.mxu1 }
 0x12c   : > { %v843_v43 = vpack.c.bf16 %v516_v16, %v515_v40  ;;  %v805_v36 = vmul.f32 %v740_v53, %v567_v63 }
 0x12d   : > { %1430 = vmatmul.msk.bf16.gmra.mxu0 %vm849_vm2, %v842_v25  ;;  %1467 = vmatmul.msk.bf16.gmra.mxu3 %vm849_vm2, %v1145_v61 }
 0x12e   : > { %v1142_v5 = vpack.c.bf16 %v805_v36, %v804_v17 }
 0x130   : > { %v2184_v6 = vpop.f32.mrf.mxu3  ;;  %v1216_v7 = vpop.f32.mrf.mxu2 }
 0x131   : > { %v1292_v2 = vadd.f32 %v1216_v7, %v1059_v3 }
 0x132   : > { %v923_v24 = vpop.f32.mrf.mxu0 }
 0x133   : > { %1325 = vst.msk [vmem:[%s2129_s18 + $0x18] sm:$0xff] %vm1321_vm4, %v1292_v2  ;;  %v1064_v39 = vadd.f32 %v2131_v50, %v923_v24  ;;  %v1076_v62 = vpop.f32.mrf.mxu1 }
 0x135   : > { %1463 = vmatmul.msk.bf16.gmra.mxu2 %vm849_vm2, %v1141_v13 }
 0x138   : > { %v2204_v4 = vpop.f32.mrf.mxu3  ;;  %v1219_v29 = vpop.f32.mrf.mxu2 }
 0x139   : > { %v1293_v52 = vadd.f32 %v1219_v29, %v1062_v9 }
 0x13a   : > { %v926_v22 = vpop.f32.mrf.mxu0 }
 0x13b   : > { %1326 = vst.msk [vmem:[%s2129_s18 + $0x20] sm:$0xff] %vm1321_vm4, %v1293_v52  ;;  %v1067_v42 = vadd.f32 %v2155_v23, %v926_v22  ;;  %v1078_v58 = vpop.f32.mrf.mxu1 }
 0x13d   : > { %1431 = vmatmul.msk.bf16.gmra.mxu0 %vm849_vm2, %v843_v43  ;;  %1468 = vmatmul.msk.bf16.gmra.mxu3 %vm849_vm2, %v1146_v51 }
 0x140   : > { %v2218_v18 = vpop.f32.mrf.mxu3  ;;  %v1221_v33 = vpop.f32.mrf.mxu2 }
 0x141   : > { %v1294_v8 = vadd.f32 %v1221_v33, %v1064_v39 }
 0x142   : > { %v928_v28 = vpop.f32.mrf.mxu0 }
 0x143   : > { %1327 = vst.msk [vmem:[%s2129_s18 + $0x28] sm:$0xff] %vm1321_vm4, %v1294_v8  ;;  %v1069_v14 = vadd.f32 %v1068_v27, %v928_v28  ;;  %v1081_v12 = vpop.f32.mrf.mxu1 }
 0x145   : > { %1464 = vmatmul.msk.bf16.gmra.mxu2 %vm849_vm2, %v1142_v5 }
 0x148   : > { %v2224_v38 = vpop.f32.mrf.mxu3  ;;  %v1224_v49 = vpop.f32.mrf.mxu2 }
 0x149   : > { %v1295_v50 = vadd.f32 %v1224_v49, %v1067_v42 }
 0x14a   : > { %v931_v41 = vpop.f32.mrf.mxu0 }
 0x14b   : > { %1328 = vst.msk [vmem:[%s2129_s18 + $0x30] sm:$0xff] %vm1321_vm4, %v1295_v50  ;;  %v1072_v61 = vadd.f32 %v1071_v37, %v931_v41  ;;  %v1083_v2 = vpop.f32.mrf.mxu1 }
 0x150   : > { %v1111_v31 = vpop.f32.mrf.mxu3  ;;  %v1226_v35 = vpop.f32.mrf.mxu2 }
 0x151   : > { %v1296_v55 = vadd.f32 %v1226_v35, %v1069_v14  ;;  %v1112_v36 = vadd.f32 %v1111_v31, %v2093_v48 }
 0x152   : > { %v933_v47 = vpop.f32.mrf.mxu0 }
 0x153   : > { %1329 = vst.msk [vmem:[%s2129_s18 + $0x38] sm:$0xff] %vm1321_vm4, %v1296_v55  ;;  %v1074_v0 = vadd.f32 %v1073_v54, %v933_v47  ;;  %v1086_v21 = vpop.f32.mrf.mxu1 }
 0x158   : > { %v1113_v23 = vpop.f32.mrf.mxu3  ;;  %v1229_v25 = vpop.f32.mrf.mxu2 }
 0x159   : > { %v1297_v53 = vadd.f32 %v1229_v25, %v1072_v61  ;;  %v1114_v41 = vadd.f32 %v1113_v23, %v2122_v56 }
 0x15a   : > { %v936_v26 = vpop.f32.mrf.mxu0 }
 0x15b   : > { %1330 = vst.msk [vmem:[%s2129_s18 + $0x40] sm:$0xff] %vm1321_vm4, %v1297_v53  ;;  %v1077_v7 = vadd.f32 %v1076_v62, %v936_v26  ;;  %v1088_v40 = vpop.f32.mrf.mxu1 }
 0x160   : > { %v1116_v46 = vpop.f32.mrf.mxu3  ;;  %v1231_v27 = vpop.f32.mrf.mxu2 }
 0x161   : > { %v1298_v3 = vadd.f32 %v1231_v27, %v1074_v0 }
 0x162   : > { %v938_v59 = vpop.f32.mrf.mxu0 }
 0x163   : > { %1331 = vst.msk [vmem:[%s2129_s18 + $0x48] sm:$0xff] %vm1321_vm4, %v1298_v3  ;;  %v1079_v1 = vadd.f32 %v1078_v58, %v938_v59  ;;  %v1091_v43 = vpop.f32.mrf.mxu1  ;;  %v1117_v58 = vadd.f32 %v1116_v46, %v2150_v15 }
 0x168   : > { %v2234_v10 = vpop.f32.mrf.mxu3  ;;  %v1234_v24 = vpop.f32.mrf.mxu2 }
 0x169   : > { %v1299_v13 = vadd.f32 %v1234_v24, %v1077_v7  ;;  %v1119_v0 = vadd.f32 %v2234_v10, %v2169_v20 }
 0x16a   : > { %v941_v11 = vpop.f32.mrf.mxu0 }
 0x16b   : > { %1332 = vst.msk [vmem:[%s2129_s18 + $0x50] sm:$0xff] %vm1321_vm4, %v1299_v13  ;;  %v1082_v37 = vadd.f32 %v1081_v12, %v941_v11  ;;  %v1093_v28 = vpop.f32.mrf.mxu1 }
 0x170   : > { %v2238_v44 = vpop.f32.mrf.mxu3  ;;  %v1236_v57 = vpop.f32.mrf.mxu2 }
 0x171   : > { %v1300_v34 = vadd.f32 %v1236_v57, %v1079_v1 }
 0x172   : > { %v943_v60 = vpop.f32.mrf.mxu0 }
 0x173   : > { %1333 = vst.msk [vmem:[%s2129_s18 + $0x58] sm:$0xff] %vm1321_vm4, %v1300_v34  ;;  %v1084_v29 = vadd.f32 %v1083_v2, %v943_v60  ;;  %v1096_v55 = vpop.f32.mrf.mxu1  ;;  %v1122_v2 = vadd.f32 %v2238_v44, %v2184_v6 }
 0x178   : > { %v2242_v30 = vpop.f32.mrf.mxu3  ;;  %v1239_v19 = vpop.f32.mrf.mxu2 }
 0x179   : > { %v1301_v16 = vadd.f32 %v1239_v19, %v1082_v37  ;;  %v1124_v57 = vadd.f32 %v2242_v30, %v2204_v4 }
 0x17a   : > { %v946_v9 = vpop.f32.mrf.mxu0 }
 0x17b   : > { %1334 = vst.msk [vmem:[%s2129_s18 + $0x60] sm:$0xff] %vm1321_vm4, %v1301_v16  ;;  %v1087_v32 = vadd.f32 %v1086_v21, %v946_v9  ;;  %v1098_v26 = vpop.f32.mrf.mxu1 }
 0x180   : > { %v2246_v45 = vpop.f32.mrf.mxu3  ;;  %v1241_v52 = vpop.f32.mrf.mxu2 }
 0x181   : > { %v1302_v22 = vadd.f32 %v1241_v52, %v1084_v29  ;;  %v1127_v16 = vadd.f32 %v2246_v45, %v2218_v18 }
 0x182   : > { %v948_v51 = vpop.f32.mrf.mxu0 }
 0x183   : > { %1335 = vst.msk [vmem:[%s2129_s18 + $0x68] sm:$0xff] %vm1321_vm4, %v1302_v22  ;;  %v1089_v33 = vadd.f32 %v1088_v40, %v948_v51  ;;  %v1101_v7 = vpop.f32.mrf.mxu1 }
 0x188   : > { %v2250_v63 = vpop.f32.mrf.mxu3  ;;  %v1244_v17 = vpop.f32.mrf.mxu2 }
 0x189   : > { %v1303_v39 = vadd.f32 %v1244_v17, %v1087_v32  ;;  %v1129_v51 = vadd.f32 %v2250_v63, %v2224_v38 }
 0x18a   : > { %v951_v54 = vpop.f32.mrf.mxu0 }
 0x18b   : > { %1336 = vst.msk [vmem:[%s2129_s18 + $0x70] sm:$0xff] %vm1321_vm4, %v1303_v39  ;;  %v1092_v62 = vadd.f32 %v1091_v43, %v951_v54  ;;  %v1103_v60 = vpop.f32.mrf.mxu1 }
 0x190   : > { %v1269_v8 = vpop.f32.mrf.mxu3  ;;  %v1246_v5 = vpop.f32.mrf.mxu2 }
 0x191   : > { %v1313_v42 = vadd.f32 %v1269_v8, %v1112_v36  ;;  %v1304_v49 = vadd.f32 %v1246_v5, %v1089_v33 }
 0x192   : > { %v953_v50 = vpop.f32.mrf.mxu0 }
 0x193   : > { %1346 = vst.msk [vmem:[%s2129_s18 + $0xc0] sm:$0xff] %vm1321_vm4, %v1313_v42  ;;  %v1094_v61 = vadd.f32 %v1093_v28, %v953_v50  ;;  %v1106_v22 = vpop.f32.mrf.mxu1 }
 0x194   : > { %1337 = vst.msk [vmem:[%s2129_s18 + $0x78] sm:$0xff] %vm1321_vm4, %v1304_v49 }
 0x198   : > { %v1271_v14 = vpop.f32.mrf.mxu3  ;;  %v1249_v48 = vpop.f32.mrf.mxu2 }
 0x199   : > { %v1314_v31 = vadd.f32 %v1271_v14, %v1114_v41  ;;  %v1305_v35 = vadd.f32 %v1249_v48, %v1092_v62 }
 0x19a   : > { %v956_v47 = vpop.f32.mrf.mxu0 }
 0x19b   : > { %1347 = vst.msk [vmem:[%s2129_s18 + $0xc8] sm:$0xff] %vm1321_vm4, %v1314_v31  ;;  %v1097_v27 = vadd.f32 %v1096_v55, %v956_v47  ;;  %v1108_v54 = vpop.f32.mrf.mxu1 }
 0x19c   : > { %1338 = vst.msk [vmem:[%s2129_s18 + $0x80] sm:$0xff] %vm1321_vm4, %v1305_v35 }
 0x1a0   : > { %v1274_v25 = vpop.f32.mrf.mxu3  ;;  %v1251_v56 = vpop.f32.mrf.mxu2 }
 0x1a1   : > { %v1315_v23 = vadd.f32 %v1274_v25, %v1117_v58  ;;  %v1306_v53 = vadd.f32 %v1251_v56, %v1094_v61 }
 0x1a2   : > { %v958_v12 = vpop.f32.mrf.mxu0 }
 0x1a3   : > { %1348 = vst.msk [vmem:[%s2129_s18 + $0xd0] sm:$0xff] %vm1321_vm4, %v1315_v23  ;;  %v1099_v13 = vadd.f32 %v1098_v26, %v958_v12 }
 0x1a4   : > { %1339 = vst.msk [vmem:[%s2129_s18 + $0x88] sm:$0xff] %vm1321_vm4, %v1306_v53 }
 0x1a8   : > { %v1276_v15 = vpop.f32.mrf.mxu3  ;;  %v1254_v46 = vpop.f32.mrf.mxu2 }
 0x1a9   : > { %v1316_v3 = vadd.f32 %v1276_v15, %v1119_v0  ;;  %v1307_v59 = vadd.f32 %v1254_v46, %v1097_v27 }
 0x1aa   : > { %v961_v24 = vpop.f32.mrf.mxu0 }
 0x1ab   : > { %1349 = vst.msk [vmem:[%s2129_s18 + $0xd8] sm:$0xff] %vm1321_vm4, %v1316_v3  ;;  %v1102_v34 = vadd.f32 %v1101_v7, %v961_v24 }
 0x1ac   : > { %1340 = vst.msk [vmem:[%s2129_s18 + $0x90] sm:$0xff] %vm1321_vm4, %v1307_v59 }
 0x1b0   : > { %v1279_v20 = vpop.f32.mrf.mxu3  ;;  %v1256_v10 = vpop.f32.mrf.mxu2 }
 0x1b1   : > { %v1317_v11 = vadd.f32 %v1279_v20, %v1122_v2  ;;  %v1308_v1 = vadd.f32 %v1256_v10, %v1099_v13 }
 0x1b2   : > { %v963_v6 = vpop.f32.mrf.mxu0 }
 0x1b3   : > { %1350 = vst.msk [vmem:[%s2129_s18 + $0xe0] sm:$0xff] %vm1321_vm4, %v1317_v11  ;;  %v1104_v9 = vadd.f32 %v1103_v60, %v963_v6 }
 0x1b4   : > { %1341 = vst.msk [vmem:[%s2129_s18 + $0x98] sm:$0xff] %vm1321_vm4, %v1308_v1 }
 0x1b8   : > { %v1281_v21 = vpop.f32.mrf.mxu3  ;;  %v1259_v44 = vpop.f32.mrf.mxu2 }
 0x1b9   : > { %v1318_v37 = vadd.f32 %v1281_v21, %v1124_v57  ;;  %v1309_v19 = vadd.f32 %v1259_v44, %v1102_v34 }
 0x1ba   : > { %v966_v52 = vpop.f32.mrf.mxu0 }
 0x1bb   : > { %1351 = vst.msk [vmem:[%s2129_s18 + $0xe8] sm:$0xff] %vm1321_vm4, %v1318_v37  ;;  %v1107_v43 = vadd.f32 %v1106_v22, %v966_v52 }
 0x1bc   : > { %1342 = vst.msk [vmem:[%s2129_s18 + $0xa0] sm:$0xff] %vm1321_vm4, %v1309_v19 }
 0x1c0   : > { %v1284_v4 = vpop.f32.mrf.mxu3  ;;  %v1261_v30 = vpop.f32.mrf.mxu2 }
 0x1c1   : > { %v1319_v40 = vadd.f32 %v1284_v4, %v1127_v16  ;;  %v1310_v29 = vadd.f32 %v1261_v30, %v1104_v9 }
 0x1c2   : > { %v968_v39 = vpop.f32.mrf.mxu0 }
 0x1c3   : > { %1352 = vst.msk [vmem:[%s2129_s18 + $0xf0] sm:$0xff] %vm1321_vm4, %v1319_v40  ;;  %v1109_v36 = vadd.f32 %v1108_v54, %v968_v39 }
 0x1c4   : > { %1343 = vst.msk [vmem:[%s2129_s18 + $0xa8] sm:$0xff] %vm1321_vm4, %v1310_v29 }
 0x1c8   : > { %v1286_v32 = vpop.f32.mrf.mxu3  ;;  %v1264_v18 = vpop.f32.mrf.mxu2 }
 0x1c9   : > { %v1320_v45 = vadd.f32 %v1286_v32, %v1129_v51  ;;  %v1311_v17 = vadd.f32 %v1264_v18, %v1107_v43 }
 0x1cb   : > { %1353 = vst.msk [vmem:[%s2129_s18 + $0xf8] sm:$0xff] %vm1321_vm4, %v1320_v45 }
 0x1cc   : > { %1344 = vst.msk [vmem:[%s2129_s18 + $0xb0] sm:$0xff] %vm1321_vm4, %v1311_v17 }
 0x1d0   : > { %v1266_v33 = vpop.f32.mrf.mxu2 }
 0x1d1   : > { %v1312_v8 = vadd.f32 %v1266_v33, %v1109_v36 }
 0x1d3   : > { %1345 = vst.msk [vmem:[%s2129_s18 + $0xb8] sm:$0xff] %vm1321_vm4, %v1312_v8 }
 0x1d4 PF: > { %s14_s15 = sadd.s32 1, %s1492_s15  }
 0x1d5   : > { %p11_p4 = scmp.ge.s32.totalorder %s14_s15, 4  }
 0x1d7   :  { %13 = sbr.rel (!%p11_p4) target bundleno = 1 (0x1), region = 68 }

</bundles_post_ra>
